<compile_context>
chip_gen: v5e
topology: v5e:2x2
jax: 0.10.0
libtpu: 0.0.40
codegen_flags: <defaults>
</compile_context>

<pallas_src>
import jax
import jax.numpy as jnp
from jax.experimental import pallas as pl
from jax.experimental.pallas import tpu as pltpu


_LANES = 128
_OUT_SUBLANES = 8


def _ce_partial_sum_kernel(x_ref, t_ref, o_ref):
    """Per-tile partial sum of row-wise cross-entropy.

    x_ref: (TN, C) logits tile (any float dtype; upcast to f32 in-kernel)
    t_ref: (TN, 1) int32 target class indices
    o_ref: (1, 8, 128) f32 -- per-tile CE sum, broadcast so the store is a
           full, lane-dense, unmasked vreg store.
    """
    x = x_ref[...].astype(jnp.float32)
    # numerically-stable log-sum-exp over the class (lane) axis
    m = jnp.max(x, axis=-1, keepdims=True)
    lse = jnp.log(jnp.sum(jnp.exp(x - m), axis=-1, keepdims=True)) + m
    # gather the target logit with a one-hot mask (vectorized, no scalar loop)
    cls = jax.lax.broadcasted_iota(jnp.int32, x.shape, 1)
    tgt_logit = jnp.sum(jnp.where(cls == t_ref[...], x, 0.0), axis=-1, keepdims=True)
    ce = lse - tgt_logit                                   # (TN, 1)
    partial = jnp.sum(ce, axis=0, keepdims=True)           # (1, 1)
    # Broadcast the scalar partial sum across the full (8,128) output tile.
    o_ref[...] = jnp.broadcast_to(partial[None], o_ref.shape)


def _pick_tile_n(n, c, itemsize, sublane, vmem_tile_budget=4 * 1024 * 1024):
    """Largest divisor of n that is a multiple of `sublane` and keeps one
    logits block under the per-buffer VMEM budget; falls back to n."""
    row_bytes = max(1, c * itemsize)
    target = min(n, max(sublane, vmem_tile_budget // row_bytes))
    target = (target // sublane) * sublane
    t = target
    while t >= sublane:
        if n % t == 0:
            return t
        t -= sublane
    return n  # small / awkward n: whole batch in one tile (always legal)


def focal_loss(logits, targets, gamma=0.0, alpha=1.0, *, tile_n=None):
    """logits: (N, C) float32/bfloat16, targets: (N,) integer class indices."""
    N, C = logits.shape
    sublane = 16 if logits.dtype == jnp.bfloat16 else 8

    if tile_n is None:
        tile_n = _pick_tile_n(N, C, jnp.dtype(logits.dtype).itemsize, sublane)
    assert N % tile_n == 0, "tile_n must divide N"
    assert tile_n == N or tile_n % sublane == 0, (
        f"tile_n must be a multiple of {sublane} (or equal to N)")

    num_tiles = N // tile_n
    t2d = targets.astype(jnp.int32).reshape(N, 1)

    partials = pl.pallas_call(
        _ce_partial_sum_kernel,
        out_shape=jax.ShapeDtypeStruct(
            (num_tiles, _OUT_SUBLANES, _LANES), jnp.float32),
        grid_spec=pltpu.PrefetchScalarGridSpec(
            num_scalar_prefetch=0,
            grid=(num_tiles,),
            in_specs=[
                pl.BlockSpec((tile_n, C), lambda i: (i, 0)),
                pl.BlockSpec((tile_n, 1), lambda i: (i, 0)),
            ],
            out_specs=pl.BlockSpec(
                (1, _OUT_SUBLANES, _LANES), lambda i: (i, 0, 0)),
        ),
        compiler_params=pltpu.CompilerParams(
            dimension_semantics=("parallel",),
            vmem_limit_bytes=32 * 1024 * 1024,
        ),
    )(logits, t2d)

    # mean CE over the batch: tiny reduction over `num_tiles` scalars
    logp = jnp.sum(partials[:, 0, 0]) / N
    p = jnp.exp(-logp)
    loss = alpha * (1.0 - p) ** gamma * logp
    return loss  # .mean() of a scalar is the scalar itself


def _reference_focal_loss(logits, targets, gamma=0.0, alpha=1.0):
    # pure-JAX reference for sanity checking
    logits = logits.astype(jnp.float32)
    logz = jax.nn.logsumexp(logits, axis=-1)
    tgt = jnp.take_along_axis(
        logits, targets[:, None].astype(jnp.int32), axis=-1)[:, 0]
    logp = jnp.mean(logz - tgt)
    p = jnp.exp(-logp)
    return alpha * (1.0 - p) ** gamma * logp


if __name__ == "__main__":
    key = jax.random.PRNGKey(0)
    k1, k2, k3, k4 = jax.random.split(key, 4)

    # small demo shapes consistent with a classification head
    N, C = 8, 32
    logits = jax.random.normal(k1, (N, C), dtype=jnp.float32)
    targets = jax.random.randint(k2, (N,), 0, C, dtype=jnp.int32)

    # non-default focal params
    out = jax.block_until_ready(focal_loss(logits, targets, gamma=2.0, alpha=0.75))
    ref = _reference_focal_loss(logits, targets, gamma=2.0, alpha=0.75)
    assert jnp.allclose(out, ref, rtol=1e-5, atol=1e-5), (out, ref)

    # default-argument path (gamma=0, alpha=1) -> plain mean cross-entropy
    out_def = jax.block_until_ready(focal_loss(logits, targets))
    ref_def = _reference_focal_loss(logits, targets)
    assert jnp.allclose(out_def, ref_def, rtol=1e-5, atol=1e-5), (out_def, ref_def)

    # multi-tile grid + lane-unaligned class count (exercises per-tile partials)
    N2, C2 = 64, 40
    logits2 = jax.random.normal(k3, (N2, C2), dtype=jnp.float32)
    targets2 = jax.random.randint(k4, (N2,), 0, C2, dtype=jnp.int32)
    out2 = jax.block_until_ready(
        focal_loss(logits2, targets2, gamma=2.0, alpha=0.5, tile_n=16))
    ref2 = _reference_focal_loss(logits2, targets2, gamma=2.0, alpha=0.5)
    assert jnp.allclose(out2, ref2, rtol=1e-5, atol=1e-5), (out2, ref2)

    # bfloat16 logits (halves HBM traffic; LSE math is still f32 in-kernel)
    logits_bf16 = logits2.astype(jnp.bfloat16)
    out3 = jax.block_until_ready(
        focal_loss(logits_bf16, targets2, gamma=2.0, alpha=0.5, tile_n=16))
    ref3 = _reference_focal_loss(logits_bf16, targets2, gamma=2.0, alpha=0.5)
    assert jnp.allclose(out3, ref3, rtol=1e-3, atol=1e-3), (out3, ref3)

    print("KERNEL_OK")
</pallas_src>

<mosaic_0001>
module attributes {stable_mosaic.version = 11 : i64} {
  func.func @_ce_partial_sum_kernel(%arg0: i32, %arg1: memref<8x32xf32, #tpu.memory_space<vmem>>, %arg2: memref<8x1xi32, #tpu.memory_space<vmem>>, %arg3: memref<1x8x128xf32, #tpu.memory_space<vmem>>) attributes {dimension_semantics = [#tpu.dimension_semantics<parallel>], iteration_bounds = array<i64: 1>, scalar_prefetch = 0 : i64, scratch_operands = 0 : i64, tpu.core_type = #tpu.core_type<tc>, window_params = [{transform_indices = @transform_0, window_bounds = array<i64: 8, 32>}, {transform_indices = @transform_1, window_bounds = array<i64: 8, 1>}, {transform_indices = @transform_2, window_bounds = array<i64: 1, 8, 128>}]} {
    %c0 = arith.constant 0 : index
    %c0_0 = arith.constant 0 : index
    %0 = vector.load %arg1[%c0, %c0_0] : memref<8x32xf32, #tpu.memory_space<vmem>>, vector<8x32xf32>
    %cst = arith.constant dense<0xFF800000> : vector<8xf32>
    %1 = vector.multi_reduction <maximumf>, %0, %cst [1] : vector<8x32xf32> to vector<8xf32>
    %2 = vector.shape_cast %1 : vector<8xf32> to vector<8x1xf32>
    %3 = vector.broadcast %2 : vector<8x1xf32> to vector<8x32xf32>
    %4 = arith.subf %0, %3 : vector<8x32xf32>
    %5 = math.exp %4 : vector<8x32xf32>
    %cst_1 = arith.constant dense<0.000000e+00> : vector<8xf32>
    %6 = vector.multi_reduction <add>, %5, %cst_1 [1] : vector<8x32xf32> to vector<8xf32>
    %7 = vector.shape_cast %6 : vector<8xf32> to vector<8x1xf32>
    %8 = math.log %7 : vector<8x1xf32>
    %9 = arith.addf %8, %2 : vector<8x1xf32>
    %10 = tpu.iota {dimensions = array<i32: 1>} : vector<8x32xi32>
    %c0_2 = arith.constant 0 : index
    %c0_3 = arith.constant 0 : index
    %11 = vector.load %arg2[%c0_2, %c0_3] : memref<8x1xi32, #tpu.memory_space<vmem>>, vector<8x1xi32>
    %12 = vector.broadcast %11 : vector<8x1xi32> to vector<8x32xi32>
    %13 = arith.cmpi eq, %10, %12 : vector<8x32xi32>
    %cst_4 = arith.constant 0.000000e+00 : f32
    %14 = vector.broadcast %cst_4 : f32 to vector<8x32xf32>
    %15 = arith.select %13, %0, %14 : vector<8x32xi1>, vector<8x32xf32>
    %cst_5 = arith.constant dense<0.000000e+00> : vector<8xf32>
    %16 = vector.multi_reduction <add>, %15, %cst_5 [1] : vector<8x32xf32> to vector<8xf32>
    %17 = vector.shape_cast %16 : vector<8xf32> to vector<8x1xf32>
    %18 = arith.subf %9, %17 : vector<8x1xf32>
    %cst_6 = arith.constant dense<0.000000e+00> : vector<1xf32>
    %19 = vector.multi_reduction <add>, %18, %cst_6 [0] : vector<8x1xf32> to vector<1xf32>
    %20 = vector.shape_cast %19 : vector<1xf32> to vector<1x1xf32>
    %21 = vector.shape_cast %20 : vector<1x1xf32> to vector<1x1x1xf32>
    %22 = vector.shape_cast %21 : vector<1x1x1xf32> to vector<1x1x1xf32>
    %23 = vector.broadcast %22 : vector<1x1x1xf32> to vector<1x8x128xf32>
    %c0_7 = arith.constant 0 : index
    %c0_8 = arith.constant 0 : index
    %c0_9 = arith.constant 0 : index
    %24 = vector.load %arg3[%c0_7, %c0_8, %c0_9] : memref<1x8x128xf32, #tpu.memory_space<vmem>>, vector<1x8x128xf32>
    tpu.vector_store %arg3[%c0_7, %c0_8, %c0_9], %23 {strides = array<i32>} : memref<1x8x128xf32, #tpu.memory_space<vmem>>, vector<1x8x128xf32>,
    return
  }
  func.func @transform_0(%arg0: i32) -> (i32, i32) {
    %c0_i32 = arith.constant 0 : i32
    %c0_i32_0 = arith.constant 0 : i32
    return %arg0, %c0_i32 : i32, i32
  }
  func.func @transform_1(%arg0: i32) -> (i32, i32) {
    %c0_i32 = arith.constant 0 : i32
    %c0_i32_0 = arith.constant 0 : i32
    return %arg0, %c0_i32 : i32, i32
  }
  func.func @transform_2(%arg0: i32) -> (i32, i32, i32) {
    %c0_i32 = arith.constant 0 : i32
    %c0_i32_0 = arith.constant 0 : i32
    %c0_i32_1 = arith.constant 0 : i32
    return %arg0, %c0_i32, %c0_i32_0 : i32, i32, i32
  }
}

</mosaic_0001>

<bundles_post_ra>
// kernel: tpu_custom_call.1
= control target key start
LH: loop header
LB: loop body
LE: loop exit
PB: predicated region body
PF: predicated region fallthrough
CT: control target
= control target key end

     0   :  { %vm13_vm0 = vcmask 261120   ;;  %s123_s0 = inlined_call_operand.vmem [shape: f32[8,32], index: 0, kind: input, shape index: {}]   ;;  %s124_s1 = inlined_call_operand.vmem [shape: s32[8,1], index: 1, kind: input, shape index: {}]   ;;  %s125_s2 = inlined_call_operand.hbm [shape: f32[1,8,128], index: 2, kind: output, shape index: {}]  }
   0x1   :  { %v12_v0 = vld [vmem:[%s123_s0] sm:$0xff] }
   0x2   :  { %7 = vsyncpa [#allocation3], 0  ;;  %v14_v1 = vsel %vm13_vm0, %v12_v0, -inf  ;;  %v94_v2 = vmov 0   ;;  %v28_v3 = vld [vmem:[%s124_s1] sm:$0xff]  ;;  %v26_v9 = vlaneseq  ;;  %s95_s0 = smov [#allocation2]  }
   0x3   :  { %63 = vset.pattern.permute.xlu0 %v94_v2  ;;  %s50_s1 = sshll.u32 %s95_s0, 4  ;;  %s52_s15 = sshll.u32 %s125_s2, 4  ;;  %s51_s1 = int_to_ptr.vmem [resolvable:$true] %s50_s1  ;;  %s53_s15 = int_to_ptr.hbm [resolvable:$true] %s52_s15 }
   0x4   :  { %15 = vmax.xlane.f32.xlu0 %v14_v1  ;;  %v27_v10 = vand.u32 127, %v26_v9 }
  0x18   :  { %30 = vperm.xlu0 %63, %v28_v3  }
  0x77   :  { %v16_v4 = vpop.xlane.xlu0 %15 }
  0x78   :  { %v17_v5 = vsub.f32 %v12_v0, %v16_v4 }
  0x7a   :  { %v18_v6 = vmul.f32 1.442695, %v17_v5 }
  0x7c   :  { %64 = vpow2.f32 %v18_v6 }
  0x82   :  { %v65_v7 = vpop.eup %64 }
  0x83   :  { %v20_v8 = vsel %vm13_vm0, %v65_v7, 0.0 }
  0x84   :  { %21 = vadd.xlane.f32.xlu1 %v20_v8 }
  0x8a   :  { %v31_v11 = vpop.permute.xlu0 %30 }
  0x8b   :  { %vm32_vm1 = vcmp.eq.s32.totalorder %v27_v10, %v31_v11 }
  0x8c   :  { %v33_v12 = vsel %vm32_vm1, %v12_v0, 0.0 }
  0x8d   :  { %v34_v13 = vsel %vm13_vm0, %v33_v12, 0.0 }
  0x8e   :  { %35 = vadd.xlane.f32.xlu1 %v34_v13 }
  0xf7   :  { %v22_v14 = vpop.xlane.xlu1 %21 }
  0xf8   :  { %66 = vlog2.f32 %v22_v14 }
  0xfe   :  { %v67_v15 = vpop.eup %66 }
  0xff   :  { %v24_v16 = vmul.f32 0.6931472, %v67_v15 }
 0x101   :  { %v25_v17 = vadd.f32 %v24_v16, %v16_v4  ;;  %v36_v18 = vpop.xlane.xlu1 %35 }
 0x103   :  { %v37_v19 = vsub.f32 %v25_v17, %v36_v18 }
 0x105   :  { %v38_v20 = vrot.slane %v37_v19, 4 }
 0x107   :  { %v39_v21 = vadd.f32 %v38_v20, %v37_v19 }
 0x109   :  { %v40_v22 = vrot.slane %v39_v21, 2 }
 0x10b   :  { %v41_v23 = vadd.f32 %v40_v22, %v39_v21 }
 0x10d   :  { %v42_v24 = vrot.slane %v41_v23, 1 }
 0x10f   :  { %v43_v25 = vadd.f32 %v42_v24, %v41_v23 }
 0x111   :  { %44 = vst [vmem:[#allocation2] sm:$0xff] %v43_v25 }
 0x112   :  { %55 = dma.vmem_to_hbm [thread:$0]  %s51_s1, 128, %s53_s15, [#allocation3]  }
 0x113   :  { %92 = dma.done.wait [#allocation3], 128  }
 0x114   :  { %93 = vsyncadd [#allocation3], 4294967168 }
 0x115   :  { %60 = vsyncpa [#allocation3], 1 }

</bundles_post_ra>
